<compile_context>
chip_gen: v7x
topology: tpu7x:2x2x1
jax: 0.10.0
libtpu: 0.0.40
codegen_flags: <defaults>
</compile_context>

<pallas_src>
import functools

import jax
import jax.numpy as jnp
from jax import lax
from jax.experimental import pallas as pl
from jax.experimental.pallas import tpu as pltpu

LANES = 128


def _round_up(x, m):
    return ((x + m - 1) // m) * m


# ----------------------------------------------------------------------------
# Kernel
# ----------------------------------------------------------------------------
def _policy_kernel(num_hidden_layers, n_classes, *refs):
    """refs = [x, (w, b) * num_hidden_layers, w_out, b_out, out]."""
    x_ref = refs[0]
    out_ref = refs[-1]
    p = refs[1:-1]

    # Activations in bf16 feed the MXU; accumulation & epilogue in f32.
    h = x_ref[...].astype(jnp.bfloat16)

    # Hidden layers: Linear + ReLU (unrolled at trace time).
    for li in range(num_hidden_layers):
        w = p[2 * li][...]          # (K_pad, N_pad) bf16
        b = p[2 * li + 1][...]      # (1, N_pad)     f32
        a = jnp.dot(h, w, preferred_element_type=jnp.float32) + b
        h = jnp.maximum(a, 0.0).astype(jnp.bfloat16)

    # Output layer.
    wo = p[2 * num_hidden_layers][...]
    bo = p[2 * num_hidden_layers + 1][...]
    logits = jnp.dot(h, wo, preferred_element_type=jnp.float32) + bo

    # Padded class columns must not receive probability mass.
    if logits.shape[-1] != n_classes:
        col = lax.broadcasted_iota(jnp.int32, logits.shape, 1)
        logits = jnp.where(col < n_classes, logits, -1e30)

    # Numerically-stable softmax over the class axis (exact normalization).
    m = jnp.max(logits, axis=-1, keepdims=True)
    e = jnp.exp(logits - m)
    denom = jnp.sum(e, axis=-1, keepdims=True)
    out_ref[...] = (e / denom).astype(out_ref.dtype)


# ----------------------------------------------------------------------------
# Wrapper
# ----------------------------------------------------------------------------
def prepare_params(params):
    """Pad each layer's feature dims to 128-lane multiples.

    Weights -> bf16 (K_pad, N_pad), biases -> f32 (1, N_pad).  Zero padding is
    exact: padded input features are zero, padded hidden units get 0 bias and
    zero outgoing weights, so results are unchanged.
    """
    prepped = []
    for i in range(0, len(params), 2):
        w, b = params[i], params[i + 1]
        k_pad = _round_up(w.shape[0], LANES)
        n_pad = _round_up(w.shape[1], LANES)
        w_p = (jnp.zeros((k_pad, n_pad), jnp.bfloat16)
               .at[: w.shape[0], : w.shape[1]].set(w.astype(jnp.bfloat16)))
        b_p = (jnp.zeros((1, n_pad), jnp.float32)
               .at[:, : b.shape[1]].set(b.astype(jnp.float32)))
        prepped += [w_p, b_p]
    return prepped


def policy_forward(x, params, *, tm=512):
    """params: flat list [w0, b0, ..., w_out, b_out]; w: (in, out), b: (1, out)."""
    num_hidden_layers = len(params) // 2 - 1
    n_classes = params[-1].shape[-1]
    batch, f_in = x.shape

    # Batch tiling (sublane-aligned), feature padding (lane-aligned).
    tm = max(8, _round_up(min(tm, batch), 8))
    b_pad = _round_up(batch, tm)
    f_in_pad = _round_up(f_in, LANES)
    out_pad = _round_up(n_classes, LANES)

    x_p = (jnp.zeros((b_pad, f_in_pad), jnp.float32)
           .at[:batch, :f_in].set(x.astype(jnp.float32)))
    prepped = prepare_params(params)

    grid = (b_pad // tm,)

    in_specs = [pl.BlockSpec((tm, f_in_pad), lambda i: (i, 0))]
    for p_arr in prepped:
        # Constant block index -> weights/biases stay resident across the grid.
        in_specs.append(pl.BlockSpec(p_arr.shape, lambda i: (0, 0)))
    out_spec = pl.BlockSpec((tm, out_pad), lambda i: (i, 0))

    # Cost estimate for XLA scheduling around the custom call.
    flops = 0
    weight_bytes = 0
    for i in range(0, len(prepped), 2):
        k_pad, n_pad = prepped[i].shape
        flops += 2 * b_pad * k_pad * n_pad
        weight_bytes += k_pad * n_pad * 2 + n_pad * 4
    bytes_accessed = 4 * b_pad * f_in_pad + weight_bytes + 4 * b_pad * out_pad
    cost = pl.CostEstimate(flops=flops,
                           transcendentals=b_pad * out_pad,
                           bytes_accessed=bytes_accessed)

    # VMEM budget: double-buffered x/out tiles + resident (double-buffered)
    # params, with 2x headroom; clamp so it is safe on v7x's 64 MiB VMEM too.
    vmem_est = 2 * tm * f_in_pad * 4 + 2 * tm * out_pad * 4 + 2 * weight_bytes
    vmem_limit = int(min(max(2 * vmem_est, 8 << 20), 48 << 20))

    kernel = functools.partial(_policy_kernel, num_hidden_layers, n_classes)

    out = pl.pallas_call(
        kernel,
        out_shape=jax.ShapeDtypeStruct((b_pad, out_pad), jnp.float32),
        grid=grid,
        in_specs=in_specs,
        out_specs=out_spec,
        compiler_params=pltpu.CompilerParams(
            dimension_semantics=("parallel",),
            vmem_limit_bytes=vmem_limit,
        ),
        cost_estimate=cost,
    )(x_p, *prepped)

    return out[:batch, :n_classes]


# ----------------------------------------------------------------------------
# Deterministic parameter init (PyTorch nn.Linear default: U(-1/sqrt(fan_in), +))
# ----------------------------------------------------------------------------
def init_policy_params(key, in_dim, hidden, out_dim):
    dims = [in_dim] + list(hidden) + [out_dim]
    params = []
    for i in range(len(dims) - 1):
        fan_in, fan_out = dims[i], dims[i + 1]
        bound = 1.0 / float(fan_in) ** 0.5
        key, kw, kb = jax.random.split(key, 3)
        w = jax.random.uniform(kw, (fan_in, fan_out), jnp.float32, -bound, bound)
        b = jax.random.uniform(kb, (1, fan_out), jnp.float32, -bound, bound)
        params += [w, b]
    return params


def policy_forward_ref(x, params, *, use_bf16=False):
    """Pure-JAX reference.  use_bf16=True mirrors the kernel's MXU precision."""
    h = x.astype(jnp.float32)
    num_hidden_layers = len(params) // 2 - 1

    def dot(a, w):
        if use_bf16:
            return jnp.dot(a.astype(jnp.bfloat16), w.astype(jnp.bfloat16),
                           preferred_element_type=jnp.float32)
        return a @ w

    for li in range(num_hidden_layers):
        h = jnp.maximum(dot(h, params[2 * li]) + params[2 * li + 1], 0.0)
    logits = dot(h, params[-2]) + params[-1]
    return jax.nn.softmax(logits, axis=-1)


# TODO(synk): Adam optimizer / train() / clone() / evaluation() are training or
# host-side utilities, not part of the forward pass, and are not translated.

# ----------------------------------------------------------------------------
if __name__ == "__main__":
    env_infos = [4, 2]          # [obs_dim, n_actions]
    hidden = [32, 32]           # hidden layer sizes
    batch = 256                 # larger batch amortizes launch/DMA overhead

    key = jax.random.PRNGKey(0)
    key, k_x, k_p = jax.random.split(key, 3)

    x = jax.random.normal(k_x, (batch, env_infos[0]), jnp.float32)
    params = init_policy_params(k_p, env_infos[0], hidden, env_infos[1])

    # tm=128 -> grid=(2,): exercises the pipelined, megacore-shardable batch axis.
    probs = policy_forward(x, params, tm=128)
    probs = jax.block_until_ready(probs)

    # Correctness checks.
    ref_bf16 = policy_forward_ref(x, params, use_bf16=True)   # same precision path
    ref_f32 = policy_forward_ref(x, params, use_bf16=False)   # full-precision sanity

    assert probs.shape == (batch, env_infos[1])
    assert bool(jnp.all(jnp.isfinite(probs)))
    assert jnp.allclose(jnp.sum(probs, axis=-1), 1.0, atol=1e-3)
    assert jnp.allclose(probs, ref_bf16, atol=2e-3, rtol=2e-3)
    assert jnp.allclose(probs, ref_f32, atol=5e-2, rtol=5e-2)

    print("KERNEL_OK")
</pallas_src>

<mosaic_0001>
module attributes {stable_mosaic.version = 11 : i64} {
  func.func @_policy_kernel(%arg0: i32, %arg1: memref<128x128xf32, #tpu.memory_space<vmem>>, %arg2: memref<128x128xbf16, #tpu.memory_space<vmem>>, %arg3: memref<1x128xf32, #tpu.memory_space<vmem>>, %arg4: memref<128x128xbf16, #tpu.memory_space<vmem>>, %arg5: memref<1x128xf32, #tpu.memory_space<vmem>>, %arg6: memref<128x128xbf16, #tpu.memory_space<vmem>>, %arg7: memref<1x128xf32, #tpu.memory_space<vmem>>, %arg8: memref<128x128xf32, #tpu.memory_space<vmem>>) attributes {dimension_semantics = [#tpu.dimension_semantics<parallel>], iteration_bounds = array<i64: 2>, scalar_prefetch = 0 : i64, scratch_operands = 0 : i64, tpu.core_type = #tpu.core_type<tc>, window_params = [{transform_indices = @transform_0, window_bounds = array<i64: 128, 128>}, {pipeline_mode = #tpu.pipeline_mode<synchronous>, transform_indices = @transform_1, window_bounds = array<i64: 128, 128>}, {pipeline_mode = #tpu.pipeline_mode<synchronous>, transform_indices = @transform_2, window_bounds = array<i64: 1, 128>}, {pipeline_mode = #tpu.pipeline_mode<synchronous>, transform_indices = @transform_3, window_bounds = array<i64: 128, 128>}, {pipeline_mode = #tpu.pipeline_mode<synchronous>, transform_indices = @transform_4, window_bounds = array<i64: 1, 128>}, {pipeline_mode = #tpu.pipeline_mode<synchronous>, transform_indices = @transform_5, window_bounds = array<i64: 128, 128>}, {pipeline_mode = #tpu.pipeline_mode<synchronous>, transform_indices = @transform_6, window_bounds = array<i64: 1, 128>}, {transform_indices = @transform_7, window_bounds = array<i64: 128, 128>}]} {
    %c0 = arith.constant 0 : index
    %c0_0 = arith.constant 0 : index
    %0 = vector.load %arg1[%c0, %c0_0] : memref<128x128xf32, #tpu.memory_space<vmem>>, vector<128x128xf32>
    %1 = arith.truncf %0 : vector<128x128xf32> to vector<128x128xbf16>
    %c0_1 = arith.constant 0 : index
    %c0_2 = arith.constant 0 : index
    %2 = vector.load %arg2[%c0_1, %c0_2] : memref<128x128xbf16, #tpu.memory_space<vmem>>, vector<128x128xbf16>
    %c0_3 = arith.constant 0 : index
    %c0_4 = arith.constant 0 : index
    %3 = vector.load %arg3[%c0_3, %c0_4] : memref<1x128xf32, #tpu.memory_space<vmem>>, vector<1x128xf32>
    %cst = arith.constant dense<0.000000e+00> : vector<128x128xf32>
    %4 = tpu.matmul %1, %2, %cst {dimension_numbers = #tpu.dot_dimension_numbers<[1], [0], [0], [1], [0, 0, 1, 1], [], []>} : vector<128x128xbf16>, vector<128x128xbf16>, vector<128x128xf32> -> vector<128x128xf32>
    %5 = vector.broadcast %3 : vector<1x128xf32> to vector<128x128xf32>
    %6 = arith.addf %4, %5 : vector<128x128xf32>
    %cst_5 = arith.constant 0.000000e+00 : f32
    %7 = vector.broadcast %cst_5 : f32 to vector<128x128xf32>
    %8 = arith.maximumf %6, %7 : vector<128x128xf32>
    %9 = arith.truncf %8 : vector<128x128xf32> to vector<128x128xbf16>
    %c0_6 = arith.constant 0 : index
    %c0_7 = arith.constant 0 : index
    %10 = vector.load %arg4[%c0_6, %c0_7] : memref<128x128xbf16, #tpu.memory_space<vmem>>, vector<128x128xbf16>
    %c0_8 = arith.constant 0 : index
    %c0_9 = arith.constant 0 : index
    %11 = vector.load %arg5[%c0_8, %c0_9] : memref<1x128xf32, #tpu.memory_space<vmem>>, vector<1x128xf32>
    %cst_10 = arith.constant dense<0.000000e+00> : vector<128x128xf32>
    %12 = tpu.matmul %9, %10, %cst_10 {dimension_numbers = #tpu.dot_dimension_numbers<[1], [0], [0], [1], [0, 0, 1, 1], [], []>} : vector<128x128xbf16>, vector<128x128xbf16>, vector<128x128xf32> -> vector<128x128xf32>
    %13 = vector.broadcast %11 : vector<1x128xf32> to vector<128x128xf32>
    %14 = arith.addf %12, %13 : vector<128x128xf32>
    %cst_11 = arith.constant 0.000000e+00 : f32
    %15 = vector.broadcast %cst_11 : f32 to vector<128x128xf32>
    %16 = arith.maximumf %14, %15 : vector<128x128xf32>
    %17 = arith.truncf %16 : vector<128x128xf32> to vector<128x128xbf16>
    %c0_12 = arith.constant 0 : index
    %c0_13 = arith.constant 0 : index
    %18 = vector.load %arg6[%c0_12, %c0_13] : memref<128x128xbf16, #tpu.memory_space<vmem>>, vector<128x128xbf16>
    %c0_14 = arith.constant 0 : index
    %c0_15 = arith.constant 0 : index
    %19 = vector.load %arg7[%c0_14, %c0_15] : memref<1x128xf32, #tpu.memory_space<vmem>>, vector<1x128xf32>
    %cst_16 = arith.constant dense<0.000000e+00> : vector<128x128xf32>
    %20 = tpu.matmul %17, %18, %cst_16 {dimension_numbers = #tpu.dot_dimension_numbers<[1], [0], [0], [1], [0, 0, 1, 1], [], []>} : vector<128x128xbf16>, vector<128x128xbf16>, vector<128x128xf32> -> vector<128x128xf32>
    %21 = vector.broadcast %19 : vector<1x128xf32> to vector<128x128xf32>
    %22 = arith.addf %20, %21 : vector<128x128xf32>
    %23 = tpu.iota {dimensions = array<i32: 1>} : vector<128x128xi32>
    %c2_i32 = arith.constant 2 : i32
    %24 = vector.broadcast %c2_i32 : i32 to vector<128x128xi32>
    %25 = arith.cmpi slt, %23, %24 : vector<128x128xi32>
    %cst_17 = arith.constant -1.000000e+30 : f32
    %26 = vector.broadcast %cst_17 : f32 to vector<128x128xf32>
    %27 = arith.select %25, %22, %26 : vector<128x128xi1>, vector<128x128xf32>
    %cst_18 = arith.constant dense<0xFF800000> : vector<128xf32>
    %28 = vector.multi_reduction <maximumf>, %27, %cst_18 [1] : vector<128x128xf32> to vector<128xf32>
    %29 = vector.shape_cast %28 : vector<128xf32> to vector<128x1xf32>
    %30 = vector.broadcast %29 : vector<128x1xf32> to vector<128x128xf32>
    %31 = arith.subf %27, %30 : vector<128x128xf32>
    %32 = math.exp %31 : vector<128x128xf32>
    %cst_19 = arith.constant dense<0.000000e+00> : vector<128xf32>
    %33 = vector.multi_reduction <add>, %32, %cst_19 [1] : vector<128x128xf32> to vector<128xf32>
    %34 = vector.shape_cast %33 : vector<128xf32> to vector<128x1xf32>
    %35 = vector.broadcast %34 : vector<128x1xf32> to vector<128x128xf32>
    %36 = arith.divf %32, %35 : vector<128x128xf32>
    %c0_20 = arith.constant 0 : index
    %c0_21 = arith.constant 0 : index
    %37 = vector.load %arg8[%c0_20, %c0_21] : memref<128x128xf32, #tpu.memory_space<vmem>>, vector<128x128xf32>
    tpu.vector_store %arg8[%c0_20, %c0_21], %36 {strides = array<i32>} : memref<128x128xf32, #tpu.memory_space<vmem>>, vector<128x128xf32>,
    return
  }
  func.func @transform_0(%arg0: i32) -> (i32, i32) {
    %c0_i32 = arith.constant 0 : i32
    %c0_i32_0 = arith.constant 0 : i32
    return %arg0, %c0_i32 : i32, i32
  }
  func.func @transform_1(%arg0: i32) -> (i32, i32) {
    %c0_i32 = arith.constant 0 : i32
    %c0_i32_0 = arith.constant 0 : i32
    %c0_i32_1 = arith.constant 0 : i32
    return %c0_i32, %c0_i32_0 : i32, i32
  }
  func.func @transform_2(%arg0: i32) -> (i32, i32) {
    %c0_i32 = arith.constant 0 : i32
    %c0_i32_0 = arith.constant 0 : i32
    %c0_i32_1 = arith.constant 0 : i32
    return %c0_i32, %c0_i32_0 : i32, i32
  }
  func.func @transform_3(%arg0: i32) -> (i32, i32) {
    %c0_i32 = arith.constant 0 : i32
    %c0_i32_0 = arith.constant 0 : i32
    %c0_i32_1 = arith.constant 0 : i32
    return %c0_i32, %c0_i32_0 : i32, i32
  }
  func.func @transform_4(%arg0: i32) -> (i32, i32) {
    %c0_i32 = arith.constant 0 : i32
    %c0_i32_0 = arith.constant 0 : i32
    %c0_i32_1 = arith.constant 0 : i32
    return %c0_i32, %c0_i32_0 : i32, i32
  }
  func.func @transform_5(%arg0: i32) -> (i32, i32) {
    %c0_i32 = arith.constant 0 : i32
    %c0_i32_0 = arith.constant 0 : i32
    %c0_i32_1 = arith.constant 0 : i32
    return %c0_i32, %c0_i32_0 : i32, i32
  }
  func.func @transform_6(%arg0: i32) -> (i32, i32) {
    %c0_i32 = arith.constant 0 : i32
    %c0_i32_0 = arith.constant 0 : i32
    %c0_i32_1 = arith.constant 0 : i32
    return %c0_i32, %c0_i32_0 : i32, i32
  }
  func.func @transform_7(%arg0: i32) -> (i32, i32) {
    %c0_i32 = arith.constant 0 : i32
    %c0_i32_0 = arith.constant 0 : i32
    return %arg0, %c0_i32 : i32, i32
  }
}

</mosaic_0001>

<bundles_post_ra>
// kernel: tpu_custom_call.1
= control target key start
LH: loop header
LB: loop body
LE: loop exit
PB: predicated region body
PF: predicated region fallthrough
CT: control target
= control target key end

     0   :  { %12 = vsyncpa [#allocation3], 0  ;;  %s2333_s0 = inlined_call_operand.hbm [shape: f32[256,128], index: 0, kind: input, shape index: {}]   ;;  %s2334_s1 = inlined_call_operand.hbm [shape: bf16[128,128], index: 1, kind: input, shape index: {}]   ;;  %s2335_s2 = inlined_call_operand.vmem [shape: f32[1,128], index: 2, kind: input, shape index: {}]   ;;  %s2336_s3 = inlined_call_operand.hbm [shape: bf16[128,128], index: 3, kind: input, shape index: {}]   ;;  %s2337_s4 = inlined_call_operand.vmem [shape: f32[1,128], index: 4, kind: input, shape index: {}]   ;;  %s2338_s5 = inlined_call_operand.hbm [shape: bf16[128,128], index: 5, kind: input, shape index: {}]   ;;  %s2339_s6 = inlined_call_operand.vmem [shape: f32[1,128], index: 6, kind: input, shape index: {}]   ;;  %s2340_s7 = inlined_call_operand.hbm [shape: f32[256,128], index: 7, kind: output, shape index: {}]  }
   0x1   :  { %14 = vsyncpa [#allocation3 + $0x1], 0 }
   0x2   :  { %15 = vsyncpa [#allocation6], 0 }
   0x3   :  { %16 = vsyncpa [#allocation9], 0 }
   0x4   :  { %17 = vsyncpa [#allocation4], 0 }
   0x5   :  { %19 = vsyncpa [#allocation4 + $0x1], 0  ;;  %s1836_s24 = smov 0   ;;  %s1838_s25 = smov 0  }
   0x6   :  { %s1840_s26 = smov 0   ;;  %s1842_s27 = smov 0  }
   0x7 LB: > { %s1857_s28 = sadd.s32 4294967295, %s1783_s27   ;;  %s1215_s29 = sadd.s32 4294967294, %s1783_s27   ;;  %s1783_s27 = sphi %s1842_s27, %s2366_s27   ;;  %s1779_s26 = sphi %s1840_s26, %s2365_s26   ;;  %s1775_s25 = sphi %s1838_s25, %s2364_s25   ;;  %s1771_s24 = sphi %s1836_s24, %s2363_s24  }
   0x8   : > { %p45_p0 = scmp.ne.s32.totalorder %s1775_s25, %s1771_s24  ;;  %p2341_p1 = scmp.eq.s32.totalorder %s1857_s28, 0 }
   0x9   : > { %p201_p3 = scmp.eq.s32.totalorder %s1215_s29, 1  ;;  %p1216_p5 = scmp.ge.s32.totalorder %s1783_s27, 1 }
   0xa   : > { %p1866_p4 = por %p2341_p1, %p45_p0  ;;  %p208_p7 = scmp.lt.s32.totalorder %s1783_s27, 3 }
   0xb   : > { %p1871_p6 = por %p201_p3, %p45_p0  ;;  %s1785_s10 = smov [#allocation5]  }
   0xc   : > { %s2345_s30 = scalar_select %p1866_p4, 1, 0 }
   0xd   : > { %s2346_s8 = scalar_select %p1871_p6, 1, 0 }
   0xe   : > { %p1876_p8 = pnand %p1216_p5, %p208_p7  ;;  %s220_s11 = sshll.u32 %s1785_s10, 4  ;;  %s1880_s11 = int_to_ptr.vmem [resolvable:$true] %s220_s11 }
   0xf   : > { %2347 = sst [smem:[#allocation15_spill]] %s2346_s8  ;;  %s1786_s13 = smov [#allocation7]  }
  0x10   : > { %s2348_s9 = scalar_select %p1876_p8, 1, 0 }
  0x11   : > { %p1440_p9 = pneg %p1876_p8  ;;  %s236_s14 = sshll.u32 %s1786_s13, 4  ;;  %s1891_s14 = int_to_ptr.vmem [resolvable:$true] %s236_s14 }
  0x12   : > { %s1787_s15 = smov [#allocation8]   ;;  %s1595_s19 = scalar_lea.hbm %s2334_s1, 1024 }
  0x13   : > { %p1887_p11 = pnand %p1440_p9, %p2341_p1  ;;  %s1893_s16 = sshll.u32 %s1787_s15, 4  ;;  %s253_s16 = int_to_ptr.vmem [resolvable:$true] %s1893_s16 }
  0x14   : > { %p1596_p12 = scmp.ne.s32.totalorder %s2334_s1, %s1595_s19  ;;  %p1602_p5 = scmp.lt.u32.totalorder %s1595_s19, %s2334_s1 }
  0x15   : > { %p1903_p13 = pneg %p1887_p11 }
  0x17   : > { %p1598_p0 = pnand %p1903_p13, %p1596_p12 }
  0x19   : > { %p1599_p3 = pneg %p1598_p0 }
  0x1b   : > { %p1604_p7 = pnand %p1602_p5, %p1599_p3 }
  0x1d   : > { %1607 = shalt.err (!%p1604_p7)
}
  0x1e   : > { %s1608_s10 = scalar_lea.vmem %s1880_s11, 1024  ;;  %p1616_p2 = scmp.lt.s32.totalorder %s1880_s11, %s1880_s11 }
  0x1f   : > { %p1609_p9 = scmp.ne.s32.totalorder %s1880_s11, %s1608_s10  ;;  %p1617_p6 = scmp.lt.s32.totalorder %s1608_s10, %s1608_s10 }
  0x21   : > { %p1611_p10 = pnand %p1609_p9, %p1903_p13  ;;  %p1618_p12 = por %p1617_p6, %p1616_p2 }
  0x23   : > { %p1612_p1 = pneg %p1611_p10 }
  0x25   : > { %p1619_p0 = pnand %p1618_p12, %p1612_p1 }
  0x27   : > { %1622 = shalt.err (!%p1619_p0)
}
  0x28   : > { %s1788_s13 = smov 64   ;;  %s1789_s15 = smov 4  }
  0x29   : > { %1443 = dma.hbm_to_vmem [thread:$0]  (!%p1887_p11), %s2334_s1, 1024, %s1880_s11, [#allocation6], %s1788_s13, %s1788_s13, %s1789_s15  }
  0x2a   : > { %s1623_s21 = scalar_lea.hbm %s2336_s3, 1024 }
  0x2b   : > { %p1624_p1 = scmp.ne.s32.totalorder %s2336_s3, %s1623_s21  ;;  %p1630_p10 = scmp.lt.u32.totalorder %s1623_s21, %s2336_s3 }
  0x2d   : > { %p1626_p2 = pnand %p1624_p1, %p1903_p13 }
  0x2f   : > { %p1627_p6 = pneg %p1626_p2 }
  0x31   : > { %p1632_p3 = pnand %p1630_p10, %p1627_p6 }
  0x33   : > { %1635 = shalt.err (!%p1632_p3)
}
  0x34   : > { %s1636_s11 = scalar_lea.vmem %s1891_s14, 1024  ;;  %p1644_p12 = scmp.lt.s32.totalorder %s1891_s14, %s1891_s14 }
  0x35   : > { %p1637_p5 = scmp.ne.s32.totalorder %s1891_s14, %s1636_s11  ;;  %p1645_p0 = scmp.lt.s32.totalorder %s1636_s11, %s1636_s11 }
  0x37   : > { %p1639_p7 = pnand %p1637_p5, %p1903_p13  ;;  %p1646_p1 = por %p1645_p0, %p1644_p12 }
  0x39   : > { %p1640_p9 = pneg %p1639_p7 }
  0x3b   : > { %p1647_p2 = pnand %p1646_p1, %p1640_p9 }
  0x3d   : > { %1650 = shalt.err (!%p1647_p2)
}
  0x3e   : > { %1446 = dma.hbm_to_vmem [thread:$0]  (!%p1887_p11), %s2336_s3, 1024, %s1891_s14, [#allocation6], %s1788_s13, %s1788_s13, %s1789_s15  }
  0x3f   : > { %s1651_s20 = scalar_lea.hbm %s2338_s5, 1024 }
  0x40   : > { %p1652_p6 = scmp.ne.s32.totalorder %s2338_s5, %s1651_s20  ;;  %p1658_p5 = scmp.lt.u32.totalorder %s1651_s20, %s2338_s5 }
  0x42   : > { %p1654_p10 = pnand %p1652_p6, %p1903_p13 }
  0x44   : > { %p1655_p3 = pneg %p1654_p10 }
  0x46   : > { %p1660_p7 = pnand %p1658_p5, %p1655_p3 }
  0x48   : > { %1663 = shalt.err (!%p1660_p7)
}
  0x49   : > { %s1664_s11 = scalar_lea.vmem %s253_s16, 1024  ;;  %p1672_p1 = scmp.lt.s32.totalorder %s253_s16, %s253_s16 }
  0x4a   : > { %p1665_p9 = scmp.ne.s32.totalorder %s253_s16, %s1664_s11  ;;  %p1673_p2 = scmp.lt.s32.totalorder %s1664_s11, %s1664_s11 }
  0x4c   : > { %p1667_p12 = pnand %p1665_p9, %p1903_p13  ;;  %p1674_p4 = por %p1673_p2, %p1672_p1 }
  0x4e   : > { %p1668_p0 = pneg %p1667_p12 }
  0x50   : > { %p1675_p8 = pnand %p1674_p4, %p1668_p0 }
  0x52   : > { %1678 = shalt.err (!%p1675_p8)
}
  0x53   : > { %1449 = dma.hbm_to_vmem [thread:$0]  (!%p1887_p11), %s2338_s5, 1024, %s253_s16, [#allocation9], %s1788_s13, %s1788_s13, %s1789_s15  }
  0x54   : > { %s1976_s22 = sadd.s32 1, %s1783_s27   ;;  %s32_s17 = sadd.s32 1, %s1779_s26 }
  0x55   : > { %s29_s12 = ssub.s32 %s1783_s27, %s1976_s22  ;;  %p39_p8 = scmp.ne.s32.totalorder %s1779_s26, %s1775_s25 }
  0x56   : > { %p30_p4 = scmp.eq.s32.totalorder %s29_s12, 0  ;;  %p40_p13 = scmp.eq.s32.totalorder %s1783_s27, 0 }
  0x57   : > { %p1461_p6 = scmp.lt.s32.totalorder %s1783_s27, 2  ;;  %p2351_p3 = scmp.eq.s32.totalorder %s1857_s28, 1 }
  0x58   : > { %s1986_s18 = scalar_select %p30_p4, %s1779_s26, %s32_s17  }
  0x59   : > { %p41_p10 = por %p40_p13, %p39_p8  ;;  %p1990_p5 = por %p2351_p3, %p39_p8 }
  0x5a   : > { %s269_s20 = sand.u32 1, %s1779_s26   ;;  %s1262_s21 = sshll.u32 %s1783_s27, 11 }
  0x5b   : > { %s1221_s16 = sshll.u32 %s269_s20, 7  ;;  %s1999_s23 = scalar_lea.hbm %s2333_s0, %s1262_s21 }
  0x5c   : > { %s273_s29 = scalar_lea.vmem [#allocation2], %s1221_s16  ;;  %p2001_p11 = pnand %p1461_p6, %p41_p10 }
  0x5d   : > { %s280_s10 = sshll.u32 %s273_s29, 4  ;;  %s2007_s14 = scalar_lea.sflag [#allocation3], %s269_s20  ;;  %s2005_s10 = int_to_ptr.vmem [resolvable:$true] %s280_s10 }
  0x5e   : > { %s1679_s8 = scalar_lea.hbm %s1999_s23, 2048  ;;  %p1681_p9 = pneg %p2001_p11 }
  0x5f   : > { %p1680_p7 = scmp.ne.s32.totalorder %s1999_s23, %s1679_s8  ;;  %s1684_s21 = scalar_lea.hbm %s2333_s0, 4096 }
  0x60   : > { %p1685_p1 = scmp.lt.u32.totalorder %s1999_s23, %s2333_s0  ;;  %p1686_p2 = scmp.lt.u32.totalorder %s1684_s21, %s1679_s8 }
  0x61   : > { %p1682_p12 = pnand %p1681_p9, %p1680_p7  ;;  %p1688_p8 = scmp.lt.u32.totalorder %s1679_s8, %s1999_s23 }
  0x62   : > { %p1687_p4 = por %p1686_p2, %p1685_p1 }
  0x63   : > { %p1683_p0 = pneg %p1682_p12 }
  0x64   : > { %p1689_p13 = por %p1688_p8, %p1687_p4 }
  0x66   : > { %p1690_p6 = pnand %p1689_p13, %p1683_p0 }
  0x68   : > { %1693 = shalt.err (!%p1690_p6)
}
  0x69   : > { %s1694_s20 = scalar_lea.vmem %s2005_s10, 2048  ;;  %s1790_s15 = smov [#allocation2]  }
  0x6a   : > { %p1695_p10 = scmp.ne.s32.totalorder %s2005_s10, %s1694_s20  ;;  %s1699_s29 = sshll.u32 %s1790_s15, 4  ;;  %s1700_s29 = int_to_ptr.vmem [resolvable:$false] %s1699_s29 }
  0x6b   : > { %s1701_s12 = scalar_lea.vmem %s1700_s29, 4096  ;;  %p1702_p12 = scmp.lt.s32.totalorder %s2005_s10, %s1700_s29 }
  0x6c   : > { %p1697_p3 = pnand %p1695_p10, %p1681_p9  ;;  %p1703_p1 = scmp.lt.s32.totalorder %s1701_s12, %s1694_s20 }
  0x6e   : > { %p1698_p7 = pneg %p1697_p3  ;;  %p1704_p2 = por %p1703_p1, %p1702_p12 }
  0x70   : > { %p1705_p4 = pnand %p1704_p2, %p1698_p7 }
  0x72   : > { %1708 = shalt.err (!%p1705_p4)
}
  0x73   : > { %s1791_s8 = smov 128   ;;  %s1792_s17 = smov 8  }
  0x74   : > { %1453 = dma.hbm_to_vmem [thread:$0]  (!%p2001_p11), %s1999_s23, 2048, %s2005_s10, %s2007_s14, %s1791_s8, %s1791_s8, %s1792_s17  }
  0x75   : > { %p2354_p9 = scmp.ne.s32.totalorder %s2348_s9, 0 }
  0x76   : > { %s2038_s21 = sand.u32 (!%p2354_p9), 1, %s1775_s25   ;;  %p2355_p0 = scmp.ne.s32.totalorder (!%p2354_p9), %s2345_s30, 0 }
  0x77   : > { %292 = sbr.rel (%p2354_p9) target bundleno = 1185 (0x4a1), region = 48  ;;  %s1225_s16 = sshll.u32 (!%p2354_p9), %s2038_s21, 7 }
  0x78   : > { %s295_s13 = scalar_lea.sflag (!%p2354_p9), [#allocation3], %s2038_s21  ;;  %s2044_s20 = scalar_lea.vmem (!%p2354_p9), [#allocation2], %s1225_s16 }
  0x7e   : > { %1754 = dma.done.wait (%p2355_p0), %s295_s13, 2048  }
  0x7f   : > { %1756 = vsyncadd (%p2355_p0), %s295_s13, 4294965248  ;;  %p2356_p11 = scmp.eq.s32.totalorder %s1857_s28, 0 }
  0x81   : > { %1758 = dma.done.wait (%p2356_p11), [#allocation6], 2048   ;;  %p2357_p8 = pmov %p2356_p11 }
  0x83   : > { %1760 = vsyncadd (%p2357_p8), [#allocation6], 4294965248  ;;  %p2358_p13 = pmov %p2357_p8 }
  0x84   : > { %p2359_p6 = pmov %p2357_p8 }
  0x85   : > { %1762 = dma.done.wait (%p2358_p13), [#allocation9], 1024  }
  0x86   : > { %1764 = vsyncadd (%p2359_p6), [#allocation9], 4294966272  ;;  %v1507_v0 = vld [vmem:[#allocation5] sm:$0xff]   ;;  %v1508_v1 = vld [vmem:[#allocation5 + $0x8] sm:$0xff]   ;;  %s2249_s15 = scalar_lea.vmem [#allocation10], %s1225_s16  ;;  %s1263_s29 = sshll.u32 %s1857_s28, 11 }
  0x87   : > { %1312 = vmatprep.subr.bf16.mxu0 %v1507_v0  ;;  %v1509_v2 = vld [vmem:[#allocation5 + $0x10] sm:$0xff]   ;;  %v1510_v3 = vld [vmem:[#allocation5 + $0x18] sm:$0xff]   ;;  %v344_v4 = vld [vmem:[%s2044_s20] sm:$0xff]  ;;  %s1113_s12 = sshll.u32 %s2249_s15, 4  ;;  %s2285_s16 = scalar_lea.hbm %s2340_s7, %s1263_s29  ;;  %s2287_s12 = int_to_ptr.vmem [resolvable:$true] %s1113_s12 }
  0x88   : > { %1313 = vmatpush3.bf16.msra.mxu0 %v1507_v0  ;;  %v345_v5 = vld [vmem:[%s2044_s20 + $0x8] sm:$0xff]  ;;  %v1511_v7 = vld [vmem:[#allocation5 + $0x20] sm:$0xff]   ;;  %v1517_v11 = vld [vmem:[#allocation7 + $0x10] sm:$0xff]   ;;  %s1100_s28 = scalar_lea.sflag [#allocation4], %s2038_s21  ;;  %s1709_s13 = scalar_lea.vmem %s2287_s12, 2048 }
  0x89   : > { %1314 = vmatprep.subr.bf16.mxu0 %v1508_v1  ;;  %v360_v6 = vpack.c.bf16 %v345_v5, %v344_v4  ;;  %v1515_v8 = vld [vmem:[#allocation7] sm:$0xff]   ;;  %v1516_v9 = vld [vmem:[#allocation7 + $0x8] sm:$0xff]   ;;  %v1513_v12 = vld [vmem:[#allocation5 + $0x30] sm:$0xff]   ;;  %p1710_p10 = scmp.ne.s32.totalorder %s2287_s12, %s1709_s13 }
  0x8a   : > { %v1512_v10 = vld [vmem:[#allocation5 + $0x28] sm:$0xff]   ;;  %1344 = vmatprep.subr.bf16.mxu1 %v1515_v8  ;;  %v1518_v13 = vld [vmem:[#allocation7 + $0x18] sm:$0xff]   ;;  %v1519_v15 = vld [vmem:[#allocation7 + $0x20] sm:$0xff]  }
  0x8b   : > { %1328 = vmatprep.mubr.bf16.mxu0 %v360_v6  ;;  %1345 = vmatpush3.bf16.msra.mxu1 %v1515_v8  ;;  %v1514_v14 = vld [vmem:[#allocation5 + $0x38] sm:$0xff]   ;;  %v346_v16 = vld [vmem:[%s2044_s20 + $0x10] sm:$0xff]  ;;  %v348_v18 = vld [vmem:[%s2044_s20 + $0x20] sm:$0xff]  ;;  %p1711_p3 = pnand %p1710_p10, %p1990_p5 }
  0x8c   : > { %1315 = vmatpush3.bf16.msra.mxu0 %v1508_v1  ;;  %1346 = vmatprep.subr.bf16.mxu1 %v1516_v9  ;;  %v347_v17 = vld [vmem:[%s2044_s20 + $0x18] sm:$0xff]  ;;  %v349_v19 = vld [vmem:[%s2044_s20 + $0x28] sm:$0xff]  ;;  %v350_v23 = vld [vmem:[%s2044_s20 + $0x30] sm:$0xff] }
  0x8d   : > { %1316 = vmatprep.subr.bf16.mxu0 %v1509_v2  ;;  %v361_v20 = vpack.c.bf16 %v347_v17, %v346_v16  ;;  %v1520_v21 = vld [vmem:[#allocation7 + $0x28] sm:$0xff]   ;;  %v362_v22 = vpack.c.bf16 %v349_v19, %v348_v18  ;;  %v351_v24 = vld [vmem:[%s2044_s20 + $0x38] sm:$0xff]  ;;  %v352_v25 = vld [vmem:[%s2044_s20 + $0x40] sm:$0xff]  ;;  %p1712_p7 = pneg %p1711_p3 }
  0x8e   : > { %v353_v26 = vld [vmem:[%s2044_s20 + $0x48] sm:$0xff]  ;;  %v363_v27 = vpack.c.bf16 %v351_v24, %v350_v23  ;;  %v354_v29 = vld [vmem:[%s2044_s20 + $0x50] sm:$0xff]  ;;  %v355_v30 = vld [vmem:[%s2044_s20 + $0x58] sm:$0xff] }
  0x8f   : > { %1347 = vmatpush3.bf16.msra.mxu1 %v1516_v9  ;;  %v364_v28 = vpack.c.bf16 %v353_v26, %v352_v25  ;;  %v356_v31 = vld [vmem:[%s2044_s20 + $0x60] sm:$0xff]  ;;  %v357_v32 = vld [vmem:[%s2044_s20 + $0x68] sm:$0xff]  ;;  %v365_v33 = vpack.c.bf16 %v355_v30, %v354_v29  ;;  %v358_v35 = vld [vmem:[%s2044_s20 + $0x70] sm:$0xff] }
  0x90   : > { %1317 = vmatpush3.bf16.msra.mxu0 %v1509_v2  ;;  %1348 = vmatprep.subr.bf16.mxu1 %v1517_v11  ;;  %v366_v34 = vpack.c.bf16 %v357_v32, %v356_v31  ;;  %v359_v36 = vld [vmem:[%s2044_s20 + $0x78] sm:$0xff]  ;;  %v1521_v38 = vld [vmem:[#allocation7 + $0x30] sm:$0xff]   ;;  %v1523_v40 = vld [vmem:[#allocation8] sm:$0xff]   ;;  %s1793_s20 = smov [#allocation10]  }
  0x91   : > { %1318 = vmatprep.subr.bf16.mxu0 %v1510_v3  ;;  %v367_v37 = vpack.c.bf16 %v359_v36, %v358_v35  ;;  %v1522_v39 = vld [vmem:[#allocation7 + $0x38] sm:$0xff]   ;;  %v1524_v41 = vld [vmem:[#allocation8 + $0x8] sm:$0xff]   ;;  %v1525_v42 = vld [vmem:[#allocation8 + $0x10] sm:$0xff]   ;;  %s1713_s30 = sshll.u32 %s1793_s20, 4  ;;  %s1714_s30 = int_to_ptr.vmem [resolvable:$false] %s1713_s30 }
  0x92   : > { %v2074_v43 = vld [vmem:[#allocation8 + $0x18] sm:$0xff]   ;;  %v2077_v44 = vld [vmem:[#allocation8 + $0x20] sm:$0xff]   ;;  %v2081_v45 = vld [vmem:[#allocation8 + $0x28] sm:$0xff]   ;;  %s1715_s9 = scalar_lea.vmem %s1714_s30, 4096  ;;  %p1716_p12 = scmp.lt.s32.totalorder %s2287_s12, %s1714_s30 }
  0x93   : > { %1349 = vmatpush3.bf16.msra.mxu1 %v1517_v11  ;;  %v2089_v46 = vld [vmem:[%s2335_s2] ss:$0 sm:$0xff]  ;;  %p1717_p1 = scmp.lt.s32.totalorder %s1715_s9, %s1709_s13 }
  0x94   : > { %1319 = vmatpush3.bf16.msra.mxu0 %v1510_v3  ;;  %1350 = vmatprep.subr.bf16.mxu1 %v1518_v13 }
  0x95   : > { %1320 = vmatprep.subr.bf16.mxu0 %v1511_v7  ;;  %p1718_p2 = por %p1717_p1, %p1716_p12 }
  0x97   : > { %1351 = vmatpush3.bf16.msra.mxu1 %v1518_v13  ;;  %p1719_p4 = pnand %p1718_p2, %p1712_p7 }
  0x98   : > { %1321 = vmatpush3.bf16.msra.mxu0 %v1511_v7  ;;  %1352 = vmatprep.subr.bf16.mxu1 %v1519_v15 }
  0x99   : > { %1322 = vmatprep.subr.bf16.mxu0 %v1512_v10 }
  0x9b   : > { %1353 = vmatpush3.bf16.msra.mxu1 %v1519_v15 }
  0x9c   : > { %1323 = vmatpush3.bf16.msra.mxu0 %v1512_v10  ;;  %1354 = vmatprep.subr.bf16.mxu1 %v1520_v21 }
  0x9d   : > { %1324 = vmatprep.subr.bf16.mxu0 %v1513_v12 }
  0x9f   : > { %1355 = vmatpush3.bf16.msra.mxu1 %v1520_v21 }
  0xa0   : > { %1325 = vmatpush3.bf16.msra.mxu0 %v1513_v12  ;;  %1356 = vmatprep.subr.bf16.mxu1 %v1521_v38 }
  0xa1   : > { %1326 = vmatprep.subr.bf16.mxu0 %v1514_v14 }
  0xa3   : > { %1357 = vmatpush3.bf16.msra.mxu1 %v1521_v38 }
  0xa4   : > { %1327 = vmatpush3.bf16.msra.mxu0 %v1514_v14  ;;  %1358 = vmatprep.subr.bf16.mxu1 %v1522_v39 }
  0xa5   : > { %1376 = vmatprep.subr.bf16.mxu0 %v1523_v40 }
  0xa7   : > { %1329 = vmatmul.mubr.bf16.vlgmr.msra.gmra.mrb[0].mxu0 %v361_v20  ;;  %1359 = vmatpush3.bf16.msra.mxu1 %v1522_v39  ;;  %v1529_v39 = vld [vmem:[#allocation8 + $0x30] sm:$0xff]  }
  0xa8   : > { %1332 = vmatprep.mubr.bf16.mxu0 %v362_v22  ;;  %1408 = vmatprep.subr.bf16.mxu1 %v1523_v40 }
  0xa9   : > { %1377 = vmatpush3.bf16.msra.mxu0 %v1523_v40 }
  0xaa   : > { %1378 = vmatprep.subr.bf16.mxu0 %v1524_v41 }
  0xad   : > { %1379 = vmatpush3.bf16.msra.mxu0 %v1524_v41 }
  0xae   : > { %1380 = vmatprep.subr.bf16.mxu0 %v1525_v42 }
  0xaf   : > { %1333 = vmatmul.mubr.bf16.gmra.mrb[4].mxu0 %v363_v27 }
  0xb0   : > { %1336 = vmatprep.mubr.bf16.mxu0 %v364_v28 }
  0xb1   : > { %1381 = vmatpush3.bf16.msra.mxu0 %v1525_v42 }
  0xb2   : > { %1382 = vmatprep.subr.bf16.mxu0 %v2074_v43 }
  0xb5   : > { %1383 = vmatpush3.bf16.msra.mxu0 %v2074_v43 }
  0xb6   : > { %1384 = vmatprep.subr.bf16.mxu0 %v2077_v44 }
  0xb7   : > { %1337 = vmatmul.mubr.bf16.gmra.mrb[8].mxu0 %v365_v33 }
  0xb8   : > { %1340 = vmatprep.mubr.bf16.mxu0 %v366_v34 }
  0xb9   : > { %1385 = vmatpush3.bf16.msra.mxu0 %v2077_v44 }
  0xba   : > { %1386 = vmatprep.subr.bf16.mxu0 %v2081_v45 }
  0xbd   : > { %1387 = vmatpush3.bf16.msra.mxu0 %v2081_v45 }
  0xbe   : > { %1388 = vmatprep.subr.bf16.mxu0 %v1529_v39 }
  0xbf   : > { %1341 = vmatmul.mubr.bf16.gmra.mrb[12].mxu0 %v367_v37 }
  0xc1   : > { %1389 = vmatpush3.bf16.msra.mxu0 %v1529_v39 }
 0x17a   : > { %v1330_v47 = vpop.f32.mrb[0].mxu0 }
 0x17b   : > { %v482_v48 = vadd.f32 %v1330_v47, %v2089_v46  ;;  %v473_v49 = vpop.f32.mrb[1].mxu0 }
 0x17c   : > { %v474_v50 = vadd.f32 %v2089_v46, %v473_v49  ;;  %v1331_v51 = vpop.f32.mrb[2].mxu0 }
 0x17d   : > { %v485_v52 = vadd.f32 %v1331_v51, %v2089_v46  ;;  %v476_v53 = vpop.f32.mrb[3].mxu0  ;;  %v538_v55 = vmax.f32 %v482_v48, 0.0 }
 0x17e   : > { %v477_v54 = vadd.f32 %v2089_v46, %v476_v53  ;;  %v536_v57 = vmax.f32 %v474_v50, 0.0 }
 0x17f   : > { %v539_v56 = vmax.f32 %v485_v52, 0.0 }
 0x180   : > { %v537_v58 = vmax.f32 %v477_v54, 0.0 }
 0x181   : > { %v553_v59 = vpack.c.bf16 %v539_v56, %v538_v55 }
 0x182   : > { %v1334_v60 = vpop.f32.mrb[4].mxu0  ;;  %v552_v61 = vpack.c.bf16 %v537_v58, %v536_v57 }
 0x183   : > { %v498_v62 = vadd.f32 %v1334_v60, %v2089_v46  ;;  %v489_v63 = vpop.f32.mrb[5].mxu0 }
 0x184   : > { %v490_v0 = vadd.f32 %v2089_v46, %v489_v63  ;;  %v1335_v1 = vpop.f32.mrb[6].mxu0  ;;  %1360 = vmatprep.mubr.bf16.mxu1 %v552_v61 }
 0x185   : > { %v542_v2 = vmax.f32 %v498_v62, 0.0  ;;  %v501_v3 = vadd.f32 %v1335_v1, %v2089_v46  ;;  %v492_v4 = vpop.f32.mrb[7].mxu0  ;;  %1361 = vmatmul.mubr.bf16.vlgmr.msra.gmra.mrb[0].mxu1 %v553_v59 }
 0x186   : > { %v493_v5 = vadd.f32 %v2089_v46, %v492_v4  ;;  %1416 = vmatpush3.bf16.msra.mxu1 %v1523_v40  ;;  %v540_v7 = vmax.f32 %v490_v0, 0.0  ;;  %v1530_v40 = vld [vmem:[#allocation8 + $0x38] sm:$0xff]  }
 0x187   : > { %v543_v6 = vmax.f32 %v501_v3, 0.0  ;;  %1409 = vmatprep.subr.bf16.mxu1 %v1524_v41  ;;  %1390 = vmatprep.subr.bf16.mxu0 %v1530_v40 }
 0x188   : > { %v541_v8 = vmax.f32 %v493_v5, 0.0  ;;  %1391 = vmatpush3.bf16.msra.mxu0 %v1530_v40 }
 0x189   : > { %v555_v9 = vpack.c.bf16 %v543_v6, %v542_v2 }
 0x18a   : > { %v554_v10 = vpack.c.bf16 %v541_v8, %v540_v7  ;;  %v1338_v11 = vpop.f32.mrb[8].mxu0  ;;  %1417 = vmatpush3.bf16.msra.mxu1 %v1524_v41  ;;  %v1239_v41 = vld [vmem:[%s2337_s4] ss:$0 sm:$0xff] }
 0x18b   : > { %v514_v12 = vadd.f32 %v1338_v11, %v2089_v46  ;;  %v505_v13 = vpop.f32.mrb[9].mxu0  ;;  %1410 = vmatprep.subr.bf16.mxu1 %v1525_v42 }
 0x18c   : > { %v506_v14 = vadd.f32 %v2089_v46, %v505_v13  ;;  %v1339_v15 = vpop.f32.mrb[10].mxu0  ;;  %1364 = vmatprep.mubr.bf16.mxu1 %v554_v10 }
 0x18d   : > { %v546_v16 = vmax.f32 %v514_v12, 0.0  ;;  %v517_v17 = vadd.f32 %v1339_v15, %v2089_v46  ;;  %v508_v18 = vpop.f32.mrb[11].mxu0  ;;  %1365 = vmatmul.mubr.bf16.gmra.mrb[4].mxu1 %v555_v9 }
 0x18e   : > { %v509_v19 = vadd.f32 %v2089_v46, %v508_v18  ;;  %1418 = vmatpush3.bf16.msra.mxu1 %v1525_v42  ;;  %v544_v21 = vmax.f32 %v506_v14, 0.0 }
 0x18f   : > { %v547_v20 = vmax.f32 %v517_v17, 0.0  ;;  %1411 = vmatprep.subr.bf16.mxu1 %v2074_v43 }
 0x190   : > { %v545_v22 = vmax.f32 %v509_v19, 0.0 }
 0x191   : > { %v557_v23 = vpack.c.bf16 %v547_v20, %v546_v16 }
 0x192   : > { %v556_v24 = vpack.c.bf16 %v545_v22, %v544_v21  ;;  %v1342_v25 = vpop.f32.mrb[12].mxu0  ;;  %1419 = vmatpush3.bf16.msra.mxu1 %v2074_v43 }
 0x193   : > { %v530_v26 = vadd.f32 %v1342_v25, %v2089_v46  ;;  %v521_v27 = vpop.f32.mrb[13].mxu0  ;;  %1412 = vmatprep.subr.bf16.mxu1 %v2077_v44 }
 0x194   : > { %v522_v28 = vadd.f32 %v2089_v46, %v521_v27  ;;  %v1343_v29 = vpop.f32.mrb[14].mxu0  ;;  %1368 = vmatprep.mubr.bf16.mxu1 %v556_v24 }
 0x195   : > { %v550_v30 = vmax.f32 %v530_v26, 0.0  ;;  %v533_v31 = vadd.f32 %v1343_v29, %v2089_v46  ;;  %v524_v32 = vpop.f32.mrb[15].mxu0  ;;  %1369 = vmatmul.mubr.bf16.gmra.mrb[8].mxu1 %v557_v23 }
 0x196   : > { %v525_v33 = vadd.f32 %v2089_v46, %v524_v32  ;;  %1420 = vmatpush3.bf16.msra.mxu1 %v2077_v44  ;;  %v548_v35 = vmax.f32 %v522_v28, 0.0 }
 0x197   : > { %v551_v34 = vmax.f32 %v533_v31, 0.0  ;;  %1413 = vmatprep.subr.bf16.mxu1 %v2081_v45 }
 0x198   : > { %v549_v36 = vmax.f32 %v525_v33, 0.0 }
 0x199   : > { %v559_v37 = vpack.c.bf16 %v551_v34, %v550_v30  ;;  %v920_v34 = vlaneseq }
 0x19a   : > { %v558_v38 = vpack.c.bf16 %v549_v36, %v548_v35  ;;  %1421 = vmatpush3.bf16.msra.mxu1 %v2081_v45  ;;  %v1248_v36 = vld [vmem:[%s2339_s6] ss:$0 sm:$0xff] }
 0x19b   : > { %1414 = vmatprep.subr.bf16.mxu1 %v1529_v39  ;;  %v2116_v35 = vand.u32 127, %v920_v34 }
 0x19c   : > { %1372 = vmatprep.mubr.bf16.mxu1 %v558_v38 }
 0x19d   : > { %1373 = vmatmul.mubr.bf16.gmra.mrb[12].mxu1 %v559_v37  ;;  %vm922_vm0 = vcmp.lt.s32.totalorder %v2116_v35, 2 }
 0x19e   : > { %1422 = vmatpush3.bf16.msra.mxu1 %v1529_v39 }
 0x19f   : > { %1415 = vmatprep.subr.bf16.mxu1 %v1530_v40 }
 0x1a2   : > { %1423 = vmatpush3.bf16.msra.mxu1 %v1530_v40 }
 0x258   : > { %v1362_v42 = vpop.f32.mrb[0].mxu1 }
 0x259   : > { %v674_v43 = vadd.f32 %v1362_v42, %v1239_v41  ;;  %v665_v44 = vpop.f32.mrb[1].mxu1 }
 0x25a   : > { %v666_v45 = vadd.f32 %v1239_v41, %v665_v44  ;;  %v1363_v46 = vpop.f32.mrb[2].mxu1 }
 0x25b   : > { %v677_v47 = vadd.f32 %v1363_v46, %v1239_v41  ;;  %v668_v48 = vpop.f32.mrb[3].mxu1  ;;  %v730_v50 = vmax.f32 %v674_v43, 0.0 }
 0x25c   : > { %v669_v49 = vadd.f32 %v1239_v41, %v668_v48  ;;  %v728_v52 = vmax.f32 %v666_v45, 0.0 }
 0x25d   : > { %v731_v51 = vmax.f32 %v677_v47, 0.0 }
 0x25e   : > { %v729_v53 = vmax.f32 %v669_v49, 0.0 }
 0x25f   : > { %v745_v54 = vpack.c.bf16 %v731_v51, %v730_v50 }
 0x260   : > { %v744_v55 = vpack.c.bf16 %v729_v53, %v728_v52  ;;  %v1366_v56 = vpop.f32.mrb[4].mxu1 }
 0x261   : > { %v690_v57 = vadd.f32 %v1366_v56, %v1239_v41  ;;  %v681_v58 = vpop.f32.mrb[5].mxu1 }
 0x262   : > { %v682_v59 = vadd.f32 %v1239_v41, %v681_v58  ;;  %v1367_v60 = vpop.f32.mrb[6].mxu1  ;;  %1392 = vmatprep.mubr.bf16.mxu0 %v744_v55 }
 0x263   : > { %v693_v61 = vadd.f32 %v1367_v60, %v1239_v41  ;;  %v684_v62 = vpop.f32.mrb[7].mxu1  ;;  %1393 = vmatmul.mubr.bf16.vlgmr.msra.gmra.mrb[16].mxu0 %v745_v54  ;;  %v734_v0 = vmax.f32 %v690_v57, 0.0 }
 0x264   : > { %v685_v63 = vadd.f32 %v1239_v41, %v684_v62  ;;  %v732_v2 = vmax.f32 %v682_v59, 0.0 }
 0x265   : > { %v735_v1 = vmax.f32 %v693_v61, 0.0 }
 0x266   : > { %v733_v3 = vmax.f32 %v685_v63, 0.0 }
 0x267   : > { %v747_v4 = vpack.c.bf16 %v735_v1, %v734_v0 }
 0x268   : > { %v746_v5 = vpack.c.bf16 %v733_v3, %v732_v2  ;;  %v1370_v6 = vpop.f32.mrb[8].mxu1 }
 0x269   : > { %v706_v7 = vadd.f32 %v1370_v6, %v1239_v41  ;;  %v697_v8 = vpop.f32.mrb[9].mxu1 }
 0x26a   : > { %v698_v9 = vadd.f32 %v1239_v41, %v697_v8  ;;  %v1371_v10 = vpop.f32.mrb[10].mxu1  ;;  %1396 = vmatprep.mubr.bf16.mxu0 %v746_v5 }
 0x26b   : > { %v709_v11 = vadd.f32 %v1371_v10, %v1239_v41  ;;  %v700_v12 = vpop.f32.mrb[11].mxu1  ;;  %1397 = vmatmul.mubr.bf16.gmra.mrb[20].mxu0 %v747_v4  ;;  %v738_v14 = vmax.f32 %v706_v7, 0.0 }
 0x26c   : > { %v701_v13 = vadd.f32 %v1239_v41, %v700_v12  ;;  %v736_v16 = vmax.f32 %v698_v9, 0.0 }
 0x26d   : > { %v739_v15 = vmax.f32 %v709_v11, 0.0 }
 0x26e   : > { %v737_v17 = vmax.f32 %v701_v13, 0.0 }
 0x26f   : > { %v749_v18 = vpack.c.bf16 %v739_v15, %v738_v14 }
 0x270   : > { %v748_v19 = vpack.c.bf16 %v737_v17, %v736_v16  ;;  %v1374_v20 = vpop.f32.mrb[12].mxu1 }
 0x271   : > { %v722_v21 = vadd.f32 %v1374_v20, %v1239_v41  ;;  %v713_v22 = vpop.f32.mrb[13].mxu1 }
 0x272   : > { %v714_v23 = vadd.f32 %v1239_v41, %v713_v22  ;;  %v1375_v24 = vpop.f32.mrb[14].mxu1  ;;  %1400 = vmatprep.mubr.bf16.mxu1 %v748_v19 }
 0x273   : > { %v725_v25 = vadd.f32 %v1375_v24, %v1239_v41  ;;  %v716_v26 = vpop.f32.mrb[15].mxu1  ;;  %1401 = vmatmul.mubr.bf16.vlgmr.msra.gmra.mrb[16].mxu1 %v749_v18  ;;  %v742_v28 = vmax.f32 %v722_v21, 0.0 }
 0x274   : > { %v717_v27 = vadd.f32 %v1239_v41, %v716_v26  ;;  %v740_v30 = vmax.f32 %v714_v23, 0.0 }
 0x275   : > { %v743_v29 = vmax.f32 %v725_v25, 0.0 }
 0x276   : > { %v741_v31 = vmax.f32 %v717_v27, 0.0 }
 0x277   : > { %v751_v32 = vpack.c.bf16 %v743_v29, %v742_v28 }
 0x278   : > { %v750_v33 = vpack.c.bf16 %v741_v31, %v740_v30 }
 0x27a   : > { %1404 = vmatprep.mubr.bf16.mxu1 %v750_v33 }
 0x27b   : > { %1405 = vmatmul.mubr.bf16.gmra.mrb[20].mxu1 %v751_v32 }
 0x336   : > { %v1394_v37 = vpop.f32.mrb[16].mxu0 }
 0x337   : > { %v866_v38 = vadd.f32 %v1394_v37, %v1248_v36  ;;  %v857_v39 = vpop.f32.mrb[17].mxu0 }
 0x338   : > { %v858_v40 = vadd.f32 %v1248_v36, %v857_v39  ;;  %v1395_v41 = vpop.f32.mrb[18].mxu0 }
 0x339   : > { %v869_v42 = vadd.f32 %v1395_v41, %v1248_v36  ;;  %v860_v43 = vpop.f32.mrb[19].mxu0  ;;  %v925_v44 = vsel %vm922_vm0, %v866_v38, -1e+30 }
 0x33a   : > { %v861_v45 = vadd.f32 %v1248_v36, %v860_v43  ;;  %943 = vmax.xlane.f32.xlu1 %v925_v44  ;;  %v923_v46 = vsel %vm922_vm0, %v858_v40, -1e+30 }
 0x33b   : > { %939 = vmax.xlane.f32.xlu0 %v923_v46  ;;  %v2128_v47 = vsel %vm922_vm0, %v869_v42, -1e+30 }
 0x33c   : > { %v2133_v49 = vsel %vm922_vm0, %v861_v45, -1e+30 }
 0x33e   : > { %945 = vmax.xlane.f32.xlu1 %v2128_v47  ;;  %v1398_v48 = vpop.f32.mrb[20].mxu0 }
 0x33f   : > { %v882_v50 = vadd.f32 %v1398_v48, %v1248_v36  ;;  %v873_v51 = vpop.f32.mrb[21].mxu0  ;;  %941 = vmax.xlane.f32.xlu0 %v2133_v49 }
 0x340   : > { %v1399_v52 = vpop.f32.mrb[22].mxu0  ;;  %v874_v56 = vadd.f32 %v1248_v36, %v873_v51 }
 0x341   : > { %v885_v53 = vadd.f32 %v1399_v52, %v1248_v36  ;;  %v876_v54 = vpop.f32.mrb[23].mxu0  ;;  %v929_v55 = vsel %vm922_vm0, %v882_v50, -1e+30 }
 0x342   : > { %v877_v57 = vadd.f32 %v1248_v36, %v876_v54  ;;  %v2142_v60 = vsel %vm922_vm0, %v874_v56, -1e+30 }
 0x343   : > { %951 = vmax.xlane.f32.xlu0 %v929_v55  ;;  %v930_v58 = vsel %vm922_vm0, %v885_v53, -1e+30 }
 0x344   : > { %953 = vmax.xlane.f32.xlu1 %v930_v58  ;;  %v928_v63 = vsel %vm922_vm0, %v877_v57, -1e+30 }
 0x346   : > { %v1402_v59 = vpop.f32.mrb[16].mxu1 }
 0x347   : > { %v898_v61 = vadd.f32 %v1402_v59, %v1248_v36  ;;  %v889_v62 = vpop.f32.mrb[17].mxu1  ;;  %947 = vmax.xlane.f32.xlu0 %v2142_v60 }
 0x348   : > { %v1403_v0 = vpop.f32.mrb[18].mxu1  ;;  %949 = vmax.xlane.f32.xlu1 %v928_v63  ;;  %v890_v4 = vadd.f32 %v1248_v36, %v889_v62 }
 0x349   : > { %v901_v1 = vadd.f32 %v1403_v0, %v1248_v36  ;;  %v892_v2 = vpop.f32.mrb[19].mxu1  ;;  %v2149_v3 = vsel %vm922_vm0, %v898_v61, -1e+30 }
 0x34a   : > { %v893_v5 = vadd.f32 %v1248_v36, %v892_v2  ;;  %v2159_v8 = vsel %vm922_vm0, %v890_v4, -1e+30 }
 0x34b   : > { %959 = vmax.xlane.f32.xlu0 %v2149_v3  ;;  %v2154_v6 = vsel %vm922_vm0, %v901_v1, -1e+30 }
 0x34c   : > { %961 = vmax.xlane.f32.xlu1 %v2154_v6  ;;  %v2164_v10 = vsel %vm922_vm0, %v893_v5, -1e+30 }
 0x34e   : > { %v1406_v7 = vpop.f32.mrb[20].mxu1 }
 0x34f   : > { %v905_v9 = vpop.f32.mrb[21].mxu1  ;;  %955 = vmax.xlane.f32.xlu0 %v2159_v8  ;;  %v914_v14 = vadd.f32 %v1406_v7, %v1248_v36 }
 0x350   : > { %v906_v11 = vadd.f32 %v1248_v36, %v905_v9  ;;  %v1407_v12 = vpop.f32.mrb[22].mxu1  ;;  %957 = vmax.xlane.f32.xlu1 %v2164_v10 }
 0x351   : > { %v908_v13 = vpop.f32.mrb[23].mxu1  ;;  %v917_v17 = vadd.f32 %v1407_v12, %v1248_v36  ;;  %v2179_v19 = vsel %vm922_vm0, %v914_v14, -1e+30 }
 0x352   : > { %v909_v15 = vadd.f32 %v1248_v36, %v908_v13  ;;  %v2169_v16 = vsel %vm922_vm0, %v906_v11, -1e+30 }
 0x353   : > { %963 = vmax.xlane.f32.xlu0 %v2169_v16  ;;  %v2184_v20 = vsel %vm922_vm0, %v917_v17, -1e+30 }
 0x354   : > { %v2174_v18 = vsel %vm922_vm0, %v909_v15, -1e+30 }
 0x355   : > { %965 = vmax.xlane.f32.xlu1 %v2174_v18 }
 0x357   : > { %967 = vmax.xlane.f32.xlu0 %v2179_v19 }
 0x359   : > { %969 = vmax.xlane.f32.xlu1 %v2184_v20 }
 0x3c7   : > { %v944_v21 = vpop.xlane.xlu1 %943 }
 0x3c8   : > { %v973_v22 = vsub.f32 %v925_v44, %v944_v21  ;;  %v940_v23 = vpop.xlane.xlu0 %939 }
 0x3c9   : > { %v971_v24 = vsub.f32 %v923_v46, %v940_v23 }
 0x3ca   : > { %v991_v25 = vmul.f32 1.442695, %v973_v22 }
 0x3cb   : > { %v987_v26 = vmul.f32 1.442695, %v971_v24  ;;  %v946_v27 = vpop.xlane.xlu1 %945 }
 0x3cc   : > { %1531 = vpow2.f32 %v991_v25  ;;  %v974_v28 = vsub.f32 %v2128_v47, %v946_v27  ;;  %v942_v29 = vpop.xlane.xlu0 %941 }
 0x3cd   : > { %v972_v30 = vsub.f32 %v2133_v49, %v942_v29  ;;  %1533 = vpow2.f32 %v987_v26 }
 0x3ce   : > { %v993_v31 = vmul.f32 1.442695, %v974_v28 }
 0x3cf   : > { %v989_v32 = vmul.f32 1.442695, %v972_v30 }
 0x3d0   : > { %1535 = vpow2.f32 %v993_v31  ;;  %v952_v33 = vpop.xlane.xlu0 %951 }
 0x3d1   : > { %v977_v34 = vsub.f32 %v929_v55, %v952_v33  ;;  %v954_v35 = vpop.xlane.xlu1 %953  ;;  %1537 = vpow2.f32 %v989_v32 }
 0x3d2   : > { %v978_v36 = vsub.f32 %v930_v58, %v954_v35 }
 0x3d3   : > { %v999_v37 = vmul.f32 1.442695, %v977_v34 }
 0x3d4   : > { %v1001_v38 = vmul.f32 1.442695, %v978_v36  ;;  %v948_v39 = vpop.xlane.xlu0 %947 }
 0x3d5   : > { %1539 = vpow2.f32 %v999_v37  ;;  %v975_v40 = vsub.f32 %v2142_v60, %v948_v39  ;;  %v950_v41 = vpop.xlane.xlu1 %949 }
 0x3d6   : > { %v2190_v42 = vpop.eup %1531  ;;  %v976_v43 = vsub.f32 %v928_v63, %v950_v41  ;;  %1541 = vpow2.f32 %v1001_v38 }
 0x3d7   : > { %v995_v44 = vmul.f32 1.442695, %v975_v40  ;;  %1023 = vadd.xlane.f32.xlu0 %v2190_v42  ;;  %v2193_v47 = vpop.eup %1533 }
 0x3d8   : > { %v997_v45 = vmul.f32 1.442695, %v976_v43  ;;  %v960_v46 = vpop.xlane.xlu0 %959 }
 0x3d9   : > { %1543 = vpow2.f32 %v995_v44  ;;  %v981_v48 = vsub.f32 %v2149_v3, %v960_v46  ;;  %v962_v49 = vpop.xlane.xlu1 %961 }
 0x3da   : > { %v2196_v50 = vpop.eup %1535  ;;  %v982_v51 = vsub.f32 %v2154_v6, %v962_v49  ;;  %1545 = vpow2.f32 %v997_v45 }
 0x3db   : > { %v1007_v52 = vmul.f32 1.442695, %v981_v48  ;;  %1025 = vadd.xlane.f32.xlu1 %v2196_v50  ;;  %1019 = vadd.xlane.f32.xlu0 %v2193_v47  ;;  %v2202_v57 = vpop.eup %1537 }
 0x3dc   : > { %v1009_v53 = vmul.f32 1.442695, %v982_v51  ;;  %v956_v54 = vpop.xlane.xlu0 %955 }
 0x3dd   : > { %1547 = vpow2.f32 %v1007_v52  ;;  %v979_v55 = vsub.f32 %v2159_v8, %v956_v54  ;;  %v958_v56 = vpop.xlane.xlu1 %957 }
 0x3de   : > { %v980_v58 = vsub.f32 %v2164_v10, %v958_v56  ;;  %1549 = vpow2.f32 %v1009_v53 }
 0x3df   : > { %v2205_v59 = vpop.eup %1539  ;;  %v1003_v60 = vmul.f32 1.442695, %v979_v55  ;;  %1021 = vadd.xlane.f32.xlu1 %v2202_v57 }
 0x3e0   : > { %v1005_v61 = vmul.f32 1.442695, %v980_v58  ;;  %1031 = vadd.xlane.f32.xlu0 %v2205_v59  ;;  %v964_v62 = vpop.xlane.xlu0 %963  ;;  %v2210_v0 = vpop.eup %1541 }
 0x3e1   : > { %1551 = vpow2.f32 %v1003_v60  ;;  %v983_v63 = vsub.f32 %v2169_v16, %v964_v62 }
 0x3e2   : > { %v966_v1 = vpop.xlane.xlu1 %965  ;;  %1553 = vpow2.f32 %v1005_v61 }
 0x3e3   : > { %v2212_v2 = vpop.eup %1543  ;;  %v1011_v3 = vmul.f32 1.442695, %v983_v63  ;;  %v984_v4 = vsub.f32 %v2174_v18, %v966_v1  ;;  %1033 = vadd.xlane.f32.xlu1 %v2210_v0 }
 0x3e4   : > { %1027 = vadd.xlane.f32.xlu0 %v2212_v2  ;;  %v968_v5 = vpop.xlane.xlu0 %967  ;;  %v2218_v8 = vpop.eup %1545 }
 0x3e5   : > { %1555 = vpow2.f32 %v1011_v3  ;;  %v1013_v6 = vmul.f32 1.442695, %v984_v4  ;;  %v985_v7 = vsub.f32 %v2179_v19, %v968_v5 }
 0x3e6   : > { %v970_v9 = vpop.xlane.xlu1 %969 }
 0x3e7   : > { %v2220_v10 = vpop.eup %1547  ;;  %1557 = vpow2.f32 %v1013_v6  ;;  %v1015_v11 = vmul.f32 1.442695, %v985_v7  ;;  %v986_v12 = vsub.f32 %v2184_v20, %v970_v9  ;;  %1029 = vadd.xlane.f32.xlu1 %v2218_v8 }
 0x3e8   : > { %1039 = vadd.xlane.f32.xlu0 %v2220_v10  ;;  %v2225_v14 = vpop.eup %1549 }
 0x3e9   : > { %1559 = vpow2.f32 %v1015_v11  ;;  %v1017_v13 = vmul.f32 1.442695, %v986_v12 }
 0x3eb   : > { %v2227_v15 = vpop.eup %1551  ;;  %1561 = vpow2.f32 %v1017_v13  ;;  %1041 = vadd.xlane.f32.xlu1 %v2225_v14 }
 0x3ec   : > { %1035 = vadd.xlane.f32.xlu0 %v2227_v15  ;;  %v2231_v16 = vpop.eup %1553 }
 0x3ef   : > { %v2233_v17 = vpop.eup %1555  ;;  %1037 = vadd.xlane.f32.xlu1 %v2231_v16 }
 0x3f0   : > { %1043 = vadd.xlane.f32.xlu0 %v2233_v17 }
 0x3f1   : > { %v2237_v18 = vpop.eup %1557 }
 0x3f3   : > { %v2239_v19 = vpop.eup %1559  ;;  %1045 = vadd.xlane.f32.xlu1 %v2237_v18 }
 0x3f4   : > { %1047 = vadd.xlane.f32.xlu0 %v2239_v19 }
 0x3f5   : > { %v2243_v20 = vpop.eup %1561 }
 0x3f7   : > { %1049 = vadd.xlane.f32.xlu1 %v2243_v20 }
 0x464   : > { %v1024_v21 = vpop.xlane.xlu0 %1023 }
 0x465   : > { %1563 = vrcp.f32 %v1024_v21 }
 0x468   : > { %v1026_v22 = vpop.xlane.xlu1 %1025  ;;  %v1020_v23 = vpop.xlane.xlu0 %1019 }
 0x469   : > { %1565 = vrcp.f32 %v1026_v22 }
 0x46a   : > { %1567 = vrcp.f32 %v1020_v23 }
 0x46c   : > { %v1022_v24 = vpop.xlane.xlu1 %1021 }
 0x46d   : > { %1569 = vrcp.f32 %v1022_v24  ;;  %v1032_v25 = vpop.xlane.xlu0 %1031 }
 0x46e   : > { %1571 = vrcp.f32 %v1032_v25 }
 0x46f   : > { %v1564_v26 = vpop.eup %1563 }
 0x470   : > { %v1056_v27 = vmul.f32 %v1564_v26, %v2190_v42  ;;  %v1034_v28 = vpop.xlane.xlu1 %1033 }
 0x471   : > { %1573 = vrcp.f32 %v1034_v28  ;;  %v1028_v29 = vpop.xlane.xlu0 %1027 }
 0x472   : > { %1085 = vst [vmem:[%s2249_s15 + $0x10] sm:$0xff] %v1056_v27  ;;  %1575 = vrcp.f32 %v1028_v29 }
 0x473   : > { %v1566_v30 = vpop.eup %1565 }
 0x474   : > { %v1568_v31 = vpop.eup %1567  ;;  %v1058_v32 = vmul.f32 %v1566_v30, %v2196_v50  ;;  %v1030_v33 = vpop.xlane.xlu1 %1029 }
 0x475   : > { %v1052_v34 = vmul.f32 %v1568_v31, %v2193_v47  ;;  %1577 = vrcp.f32 %v1030_v33  ;;  %v1040_v35 = vpop.xlane.xlu0 %1039 }
 0x476   : > { %1086 = vst [vmem:[%s2249_s15 + $0x18] sm:$0xff] %v1058_v32  ;;  %1579 = vrcp.f32 %v1040_v35 }
 0x477   : > { %v1570_v36 = vpop.eup %1569  ;;  %1083 = vst [vmem:[%s2249_s15] sm:$0xff] %v1052_v34 }
 0x478   : > { %v1572_v37 = vpop.eup %1571  ;;  %v1054_v38 = vmul.f32 %v1570_v36, %v2202_v57  ;;  %v1042_v39 = vpop.xlane.xlu1 %1041 }
 0x479   : > { %v1064_v40 = vmul.f32 %v1572_v37, %v2205_v59  ;;  %1581 = vrcp.f32 %v1042_v39  ;;  %v1036_v41 = vpop.xlane.xlu0 %1035 }
 0x47a   : > { %1084 = vst [vmem:[%s2249_s15 + $0x8] sm:$0xff] %v1054_v38  ;;  %1583 = vrcp.f32 %v1036_v41 }
 0x47b   : > { %v1574_v42 = vpop.eup %1573  ;;  %1089 = vst [vmem:[%s2249_s15 + $0x30] sm:$0xff] %v1064_v40 }
 0x47c   : > { %v1576_v43 = vpop.eup %1575  ;;  %v1066_v44 = vmul.f32 %v1574_v42, %v2210_v0  ;;  %v1038_v45 = vpop.xlane.xlu1 %1037 }
 0x47d   : > { %v1060_v46 = vmul.f32 %v1576_v43, %v2212_v2  ;;  %1585 = vrcp.f32 %v1038_v45  ;;  %v1044_v47 = vpop.xlane.xlu0 %1043 }
 0x47e   : > { %1090 = vst [vmem:[%s2249_s15 + $0x38] sm:$0xff] %v1066_v44  ;;  %1587 = vrcp.f32 %v1044_v47 }
 0x47f   : > { %v1578_v48 = vpop.eup %1577  ;;  %1087 = vst [vmem:[%s2249_s15 + $0x20] sm:$0xff] %v1060_v46 }
 0x480   : > { %v1580_v49 = vpop.eup %1579  ;;  %v1062_v50 = vmul.f32 %v1578_v48, %v2218_v8  ;;  %v1046_v51 = vpop.xlane.xlu1 %1045 }
 0x481   : > { %v1072_v52 = vmul.f32 %v1580_v49, %v2220_v10  ;;  %1589 = vrcp.f32 %v1046_v51  ;;  %v1048_v53 = vpop.xlane.xlu0 %1047 }
 0x482   : > { %1088 = vst [vmem:[%s2249_s15 + $0x28] sm:$0xff] %v1062_v50  ;;  %1591 = vrcp.f32 %v1048_v53 }
 0x483   : > { %v1582_v54 = vpop.eup %1581  ;;  %1093 = vst [vmem:[%s2249_s15 + $0x50] sm:$0xff] %v1072_v52 }
 0x484   : > { %v1584_v55 = vpop.eup %1583  ;;  %v1074_v56 = vmul.f32 %v1582_v54, %v2225_v14  ;;  %v1050_v57 = vpop.xlane.xlu1 %1049 }
 0x485   : > { %v1068_v58 = vmul.f32 %v1584_v55, %v2227_v15  ;;  %1593 = vrcp.f32 %v1050_v57 }
 0x486   : > { %1094 = vst [vmem:[%s2249_s15 + $0x58] sm:$0xff] %v1074_v56 }
 0x487   : > { %v1586_v59 = vpop.eup %1585  ;;  %1091 = vst [vmem:[%s2249_s15 + $0x40] sm:$0xff] %v1068_v58 }
 0x488   : > { %v1588_v60 = vpop.eup %1587  ;;  %v1070_v61 = vmul.f32 %v1586_v59, %v2231_v16 }
 0x489   : > { %v1076_v62 = vmul.f32 %v1588_v60, %v2233_v17 }
 0x48a   : > { %1092 = vst [vmem:[%s2249_s15 + $0x48] sm:$0xff] %v1070_v61 }
 0x48b   : > { %v1590_v63 = vpop.eup %1589  ;;  %1095 = vst [vmem:[%s2249_s15 + $0x60] sm:$0xff] %v1076_v62 }
 0x48c   : > { %v1592_v0 = vpop.eup %1591  ;;  %v1078_v1 = vmul.f32 %v1590_v63, %v2237_v18 }
 0x48d   : > { %v1080_v2 = vmul.f32 %v1592_v0, %v2239_v19 }
 0x48e   : > { %1096 = vst [vmem:[%s2249_s15 + $0x68] sm:$0xff] %v1078_v1 }
 0x48f   : > { %v1594_v3 = vpop.eup %1593  ;;  %1097 = vst [vmem:[%s2249_s15 + $0x70] sm:$0xff] %v1080_v2 }
 0x490   : > { %v1082_v4 = vmul.f32 %v1594_v3, %v2243_v20 }
 0x492   : > { %1098 = vst [vmem:[%s2249_s15 + $0x78] sm:$0xff] %v1082_v4 }
 0x493   : > { %1722 = shalt.err (!%p1719_p4)
}
 0x494   : > { %s1723_s23 = scalar_lea.hbm %s2285_s16, 2048  ;;  %s1727_s14 = scalar_lea.hbm %s2340_s7, 4096 }
 0x495   : > { %p1724_p9 = scmp.ne.s32.totalorder %s2285_s16, %s1723_s23  ;;  %p1728_p8 = scmp.lt.u32.totalorder %s2285_s16, %s2340_s7 }
 0x496   : > { %p1729_p13 = scmp.lt.u32.totalorder %s1727_s14, %s1723_s23  ;;  %p1731_p10 = scmp.lt.u32.totalorder %s1723_s23, %s2285_s16 }
 0x497   : > { %p1725_p0 = pnand %p1724_p9, %p1990_p5 }
 0x498   : > { %p1730_p6 = por %p1729_p13, %p1728_p8 }
 0x499   : > { %p1726_p11 = pneg %p1725_p0 }
 0x49a   : > { %p1732_p3 = por %p1731_p10, %p1730_p6 }
 0x49c   : > { %p1733_p7 = pnand %p1732_p3, %p1726_p11 }
 0x49e   : > { %1736 = shalt.err (!%p1733_p7)
}
 0x49f   : > { %s1794_s8 = smov 128   ;;  %s1795_s17 = smov 8  }
 0x4a0   : > { %1438 = dma.vmem_to_hbm [thread:$0]  (%p1990_p5), %s2287_s12, 2048, %s2285_s16, %s1100_s28, %s1794_s8, %s1794_s8, %s1795_s17  }
 0x4a1 PF: > { %s2360_s13 = sld [smem:[#allocation15_spill]]  ;;  %s1128_s20 = sand.u32 1, %s1771_s24  }
 0x4a2   : > { %p2362_p1 = scmp.ge.s32.totalorder %s1783_s27, 2  ;;  %s1129_s30 = scalar_lea.sflag [#allocation4], %s1128_s20 }
 0x4a7   : > { %p2361_p12 = scmp.ne.s32.totalorder %s2360_s13, 0 }
 0x4a9   : > { %p1455_p2 = pnand %p2362_p1, %p2361_p12 }
 0x4ab   : > { %1766 = dma.done.wait (!%p1455_p2), %s1129_s30, 2048  }
 0x4ac   : > { %1768 = vsyncadd (!%p1455_p2), %s1129_s30, 4294965248  ;;  %p22_p4 = scmp.ge.s32.totalorder %s1976_s22, 4   ;;  %s2363_s24 = smov %s1775_s25 }
 0x4ad   : > { %s2364_s25 = smov %s1779_s26  ;;  %s2365_s26 = smov %s1986_s18 }
 0x4ae   : > { %s2366_s27 = smov %s1976_s22  ;;  %24 = sbr.rel (!%p22_p4) target bundleno = 7 (0x7), region = 105 }
 0x4b5   :  { %1134 = vsyncpa [#allocation3], 1 }
 0x4b6   :  { %1136 = vsyncpa [#allocation3 + $0x1], 1 }
 0x4b7   :  { %1137 = vsyncpa [#allocation6], 1 }
 0x4b8   :  { %1138 = vsyncpa [#allocation9], 1 }
 0x4b9   :  { %1139 = vsyncpa [#allocation4], 1 }
 0x4ba   :  { %1141 = vsyncpa [#allocation4 + $0x1], 1 }

</bundles_post_ra>
